<compile_context>
chip_gen: v7x
topology: tpu7x:2x2x1
jax: 0.10.0
libtpu: 0.0.40
codegen_flags: <defaults>
</compile_context>

<pallas_src>
import functools

import jax
import jax.numpy as jnp
from jax.experimental import pallas as pl
from jax.experimental.pallas import tpu as pltpu


def _round_up(x, m):
    return ((x + m - 1) // m) * m


def mlp_softmax_kernel(x_ref, w1_ref, w2_ref, w3_ref, w4_ref, b_ref, o_ref):
    # Packed biases: row j = bias of layer j+1, zero-padded to the padded layer width.
    # Row 3 (fc4) is padded with -1e30 so the padded logit lanes vanish under softmax.
    bp = b_ref[...]
    b1 = bp[0:1, : w1_ref.shape[1]]
    b2 = bp[1:2, : w2_ref.shape[1]]
    b3 = bp[2:3, : w3_ref.shape[1]]
    b4 = bp[3:4, : w4_ref.shape[1]]

    # x arrives f32 (no wrapper cast pass); cast to bf16 here — hides under the x DMA.
    x = x_ref[...].astype(jnp.bfloat16)

    h = jnp.dot(x, w1_ref[...], preferred_element_type=jnp.float32) + b1
    h = jnp.maximum(h, 0.0).astype(jnp.bfloat16)

    h = jnp.dot(h, w2_ref[...], preferred_element_type=jnp.float32) + b2
    h = jnp.maximum(h, 0.0).astype(jnp.bfloat16)

    h = jnp.dot(h, w3_ref[...], preferred_element_type=jnp.float32) + b3
    h = jnp.maximum(h, 0.0).astype(jnp.bfloat16)

    # fc4 padded to 8 output lanes; padded lanes have zero weights + bias -1e30 -> exp() == 0.
    logits = jnp.dot(h, w4_ref[...], preferred_element_type=jnp.float32) + b4
    m = jnp.max(logits, axis=1, keepdims=True)
    e = jnp.exp(logits - m)
    denom = jnp.sum(e, axis=1, keepdims=True)
    o_ref[...] = (e / denom).astype(o_ref.dtype)  # exact normalize; (TB,1) divide is free


def _pad2d(w, rows, cols):
    """Zero-pad a [in, out] weight to [rows, cols]."""
    return jnp.zeros((rows, cols), w.dtype).at[: w.shape[0], : w.shape[1]].set(w)


def _pack_biases(b1, b2, b3, b4, width, out_pad):
    rows = []
    for b in (b1, b2, b3):
        b = b.reshape(-1).astype(jnp.float32)
        rows.append(jnp.pad(b, (0, width - b.shape[0])))
    b4 = b4.reshape(-1).astype(jnp.float32)
    b4 = jnp.pad(b4, (0, out_pad - b4.shape[0]), constant_values=-1e30)
    rows.append(jnp.pad(b4, (0, width - out_pad)))
    return jnp.stack(rows, axis=0)  # [4, width] f32


@functools.partial(jax.jit, static_argnames=("max_tile",))
def net_forward(x, params, *, max_tile=1024):
    (w1, b1), (w2, b2), (w3, b3), (w4, b4) = params
    B, D = x.shape
    n_cls = w4.shape[1]

    # Padded layer widths (128-lane multiples) and the lane-narrow output block.
    H1, H2, H3 = 384, 128, 128          # 350 -> 384, 100 -> 128, 20 -> 128
    OUT_PAD = 8                          # 2 real classes + 6 dead lanes (bias -1e30)
    BIAS_W = 384                         # >= widest padded bias, multiple of 128

    # bf16 weights halve the (one-time) HBM->VMEM weight traffic; MXU accumulates in f32.
    w1p = _pad2d(w1.astype(jnp.bfloat16), D, H1)
    w2p = _pad2d(w2.astype(jnp.bfloat16), H1, H2)
    w3p = _pad2d(w3.astype(jnp.bfloat16), H2, H3)
    w4p = _pad2d(w4.astype(jnp.bfloat16), H3, OUT_PAD)
    bpack = _pack_biases(b1, b2, b3, b4, BIAS_W, OUT_PAD)

    # Batch tiling. Prefer a TB (multiple of 8) that divides the 8-aligned batch so we
    # never run a pad copy-pass over x; otherwise fall back to max_tile + pad.
    max_tile = max(8, (max_tile // 8) * 8)
    B8 = _round_up(B, 8)
    if B8 <= max_tile:
        TB = B8
    else:
        TB = max_tile
        for t in range(max_tile, max_tile // 2 - 1, -8):
            if B8 % t == 0:
                TB = t
                break
    Bp = _round_up(B, TB)
    xp = x if Bp == B else jnp.pad(x, ((0, Bp - B), (0, 0)))
    grid = (Bp // TB,)

    def resident(arr):
        # Same block every grid step -> DMA'd once, stays VMEM-resident.
        return pl.BlockSpec(arr.shape, lambda i: (0, 0))

    mm = D * H1 + H1 * H2 + H2 * H3 + H3 * OUT_PAD
    cost = pl.CostEstimate(
        flops=2 * Bp * mm,
        transcendentals=Bp * OUT_PAD,
        bytes_accessed=Bp * D * 4 + Bp * OUT_PAD * 4 + 2 * mm + 4 * BIAS_W * 4,
    )

    out = pl.pallas_call(
        mlp_softmax_kernel,
        out_shape=jax.ShapeDtypeStruct((Bp, OUT_PAD), jnp.float32),
        grid=grid,
        in_specs=[
            pl.BlockSpec((TB, D), lambda i: (i, 0)),
            resident(w1p),
            resident(w2p),
            resident(w3p),
            resident(w4p),
            resident(bpack),
        ],
        out_specs=pl.BlockSpec((TB, OUT_PAD), lambda i: (i, 0)),
        compiler_params=pltpu.CompilerParams(
            dimension_semantics=("parallel",),      # shards batch steps across TCs on v7x
            vmem_limit_bytes=48 * 1024 * 1024,      # large TB on v5e; headroom on v7x
        ),
        cost_estimate=cost,
    )(xp, w1p, w2p, w3p, w4p, bpack)

    return out[:B, :n_cls]


def init_linear(key, fan_in, fan_out):
    """Matches PyTorch nn.Linear's U(-1/sqrt(fan_in), 1/sqrt(fan_in)); stored [in, out]."""
    kw, kb = jax.random.split(key)
    bound = 1.0 / jnp.sqrt(jnp.float32(fan_in))
    w = jax.random.uniform(kw, (fan_in, fan_out), jnp.float32, -bound, bound)
    b = jax.random.uniform(kb, (1, fan_out), jnp.float32, -bound, bound)
    return w, b


def ref_forward(x, params):
    (w1, b1), (w2, b2), (w3, b3), (w4, b4) = params
    h = jnp.maximum(x @ w1 + b1, 0.0)
    h = jnp.maximum(h @ w2 + b2, 0.0)
    h = jnp.maximum(h @ w3 + b3, 0.0)
    return jax.nn.softmax(h @ w4 + b4, axis=1)


if __name__ == "__main__":
    key = jax.random.PRNGKey(0)
    k_x, k1, k2, k3, k4 = jax.random.split(key, 5)

    B = 8  # small batch for the check; large batches tile at TB<=1024 per grid step
    x = jax.random.normal(k_x, (B, 700), jnp.float32)

    params = (
        init_linear(k1, 700, 350),
        init_linear(k2, 350, 100),
        init_linear(k3, 100, 20),
        init_linear(k4, 20, 2),
    )

    out = net_forward(x, params)
    out = jax.block_until_ready(out)

    # sanity: shape, softmax rows sum to ~1, and it matches the f32 reference
    # (loose tolerance: bf16 weights/activations inside the kernel).
    assert out.shape == (B, 2)
    assert jnp.allclose(jnp.sum(out, axis=1), 1.0, atol=1e-3)
    ref = ref_forward(x, params)
    assert jnp.allclose(out, ref, atol=5e-2), float(jnp.max(jnp.abs(out - ref)))

    print("KERNEL_OK")
</pallas_src>

<mosaic_0001>
module attributes {stable_mosaic.version = 11 : i64} {
  func.func @mlp_softmax_kernel(%arg0: i32, %arg1: memref<8x700xf32, #tpu.memory_space<vmem>>, %arg2: memref<700x384xbf16, #tpu.memory_space<vmem>>, %arg3: memref<384x128xbf16, #tpu.memory_space<vmem>>, %arg4: memref<128x128xbf16, #tpu.memory_space<vmem>>, %arg5: memref<128x8xbf16, #tpu.memory_space<vmem>>, %arg6: memref<4x384xf32, #tpu.memory_space<vmem>>, %arg7: memref<8x8xf32, #tpu.memory_space<vmem>>) attributes {dimension_semantics = [#tpu.dimension_semantics<parallel>], iteration_bounds = array<i64: 1>, scalar_prefetch = 0 : i64, scratch_operands = 0 : i64, tpu.core_type = #tpu.core_type<tc>, window_params = [{transform_indices = @transform_0, window_bounds = array<i64: 8, 700>}, {pipeline_mode = #tpu.pipeline_mode<synchronous>, transform_indices = @transform_1, window_bounds = array<i64: 700, 384>}, {pipeline_mode = #tpu.pipeline_mode<synchronous>, transform_indices = @transform_2, window_bounds = array<i64: 384, 128>}, {pipeline_mode = #tpu.pipeline_mode<synchronous>, transform_indices = @transform_3, window_bounds = array<i64: 128, 128>}, {pipeline_mode = #tpu.pipeline_mode<synchronous>, transform_indices = @transform_4, window_bounds = array<i64: 128, 8>}, {pipeline_mode = #tpu.pipeline_mode<synchronous>, transform_indices = @transform_5, window_bounds = array<i64: 4, 384>}, {transform_indices = @transform_6, window_bounds = array<i64: 8, 8>}]} {
    %c0 = arith.constant 0 : index
    %c0_0 = arith.constant 0 : index
    %0 = vector.load %arg6[%c0, %c0_0] : memref<4x384xf32, #tpu.memory_space<vmem>>, vector<4x384xf32>
    %1 = vector.extract_strided_slice %0 {offsets = [0, 0], sizes = [1, 384], strides = [1, 1]} : vector<4x384xf32> to vector<1x384xf32>
    %2 = vector.extract_strided_slice %0 {offsets = [1, 0], sizes = [1, 128], strides = [1, 1]} : vector<4x384xf32> to vector<1x128xf32>
    %3 = vector.extract_strided_slice %0 {offsets = [2, 0], sizes = [1, 128], strides = [1, 1]} : vector<4x384xf32> to vector<1x128xf32>
    %4 = vector.extract_strided_slice %0 {offsets = [3, 0], sizes = [1, 8], strides = [1, 1]} : vector<4x384xf32> to vector<1x8xf32>
    %c0_1 = arith.constant 0 : index
    %c0_2 = arith.constant 0 : index
    %5 = vector.load %arg1[%c0_1, %c0_2] : memref<8x700xf32, #tpu.memory_space<vmem>>, vector<8x700xf32>
    %6 = arith.truncf %5 : vector<8x700xf32> to vector<8x700xbf16>
    %c0_3 = arith.constant 0 : index
    %c0_4 = arith.constant 0 : index
    %7 = vector.load %arg2[%c0_3, %c0_4] : memref<700x384xbf16, #tpu.memory_space<vmem>>, vector<700x384xbf16>
    %cst = arith.constant dense<0.000000e+00> : vector<8x384xf32>
    %8 = tpu.matmul %6, %7, %cst {dimension_numbers = #tpu.dot_dimension_numbers<[1], [0], [0], [1], [0, 0, 1, 1], [], []>} : vector<8x700xbf16>, vector<700x384xbf16>, vector<8x384xf32> -> vector<8x384xf32>
    %9 = vector.broadcast %1 : vector<1x384xf32> to vector<8x384xf32>
    %10 = arith.addf %8, %9 : vector<8x384xf32>
    %cst_5 = arith.constant 0.000000e+00 : f32
    %11 = vector.broadcast %cst_5 : f32 to vector<8x384xf32>
    %12 = arith.maximumf %10, %11 : vector<8x384xf32>
    %13 = arith.truncf %12 : vector<8x384xf32> to vector<8x384xbf16>
    %c0_6 = arith.constant 0 : index
    %c0_7 = arith.constant 0 : index
    %14 = vector.load %arg3[%c0_6, %c0_7] : memref<384x128xbf16, #tpu.memory_space<vmem>>, vector<384x128xbf16>
    %cst_8 = arith.constant dense<0.000000e+00> : vector<8x128xf32>
    %15 = tpu.matmul %13, %14, %cst_8 {dimension_numbers = #tpu.dot_dimension_numbers<[1], [0], [0], [1], [0, 0, 1, 1], [], []>} : vector<8x384xbf16>, vector<384x128xbf16>, vector<8x128xf32> -> vector<8x128xf32>
    %16 = vector.broadcast %2 : vector<1x128xf32> to vector<8x128xf32>
    %17 = arith.addf %15, %16 : vector<8x128xf32>
    %cst_9 = arith.constant 0.000000e+00 : f32
    %18 = vector.broadcast %cst_9 : f32 to vector<8x128xf32>
    %19 = arith.maximumf %17, %18 : vector<8x128xf32>
    %20 = arith.truncf %19 : vector<8x128xf32> to vector<8x128xbf16>
    %c0_10 = arith.constant 0 : index
    %c0_11 = arith.constant 0 : index
    %21 = vector.load %arg4[%c0_10, %c0_11] : memref<128x128xbf16, #tpu.memory_space<vmem>>, vector<128x128xbf16>
    %cst_12 = arith.constant dense<0.000000e+00> : vector<8x128xf32>
    %22 = tpu.matmul %20, %21, %cst_12 {dimension_numbers = #tpu.dot_dimension_numbers<[1], [0], [0], [1], [0, 0, 1, 1], [], []>} : vector<8x128xbf16>, vector<128x128xbf16>, vector<8x128xf32> -> vector<8x128xf32>
    %23 = vector.broadcast %3 : vector<1x128xf32> to vector<8x128xf32>
    %24 = arith.addf %22, %23 : vector<8x128xf32>
    %cst_13 = arith.constant 0.000000e+00 : f32
    %25 = vector.broadcast %cst_13 : f32 to vector<8x128xf32>
    %26 = arith.maximumf %24, %25 : vector<8x128xf32>
    %27 = arith.truncf %26 : vector<8x128xf32> to vector<8x128xbf16>
    %c0_14 = arith.constant 0 : index
    %c0_15 = arith.constant 0 : index
    %28 = vector.load %arg5[%c0_14, %c0_15] : memref<128x8xbf16, #tpu.memory_space<vmem>>, vector<128x8xbf16>
    %cst_16 = arith.constant dense<0.000000e+00> : vector<8x8xf32>
    %29 = tpu.matmul %27, %28, %cst_16 {dimension_numbers = #tpu.dot_dimension_numbers<[1], [0], [0], [1], [0, 0, 1, 1], [], []>} : vector<8x128xbf16>, vector<128x8xbf16>, vector<8x8xf32> -> vector<8x8xf32>
    %30 = vector.broadcast %4 : vector<1x8xf32> to vector<8x8xf32>
    %31 = arith.addf %29, %30 : vector<8x8xf32>
    %cst_17 = arith.constant dense<0xFF800000> : vector<8xf32>
    %32 = vector.multi_reduction <maximumf>, %31, %cst_17 [1] : vector<8x8xf32> to vector<8xf32>
    %33 = vector.shape_cast %32 : vector<8xf32> to vector<8x1xf32>
    %34 = vector.broadcast %33 : vector<8x1xf32> to vector<8x8xf32>
    %35 = arith.subf %31, %34 : vector<8x8xf32>
    %36 = math.exp %35 : vector<8x8xf32>
    %cst_18 = arith.constant dense<0.000000e+00> : vector<8xf32>
    %37 = vector.multi_reduction <add>, %36, %cst_18 [1] : vector<8x8xf32> to vector<8xf32>
    %38 = vector.shape_cast %37 : vector<8xf32> to vector<8x1xf32>
    %39 = vector.broadcast %38 : vector<8x1xf32> to vector<8x8xf32>
    %40 = arith.divf %36, %39 : vector<8x8xf32>
    %c0_19 = arith.constant 0 : index
    %c0_20 = arith.constant 0 : index
    %41 = vector.load %arg7[%c0_19, %c0_20] : memref<8x8xf32, #tpu.memory_space<vmem>>, vector<8x8xf32>
    tpu.vector_store %arg7[%c0_19, %c0_20], %40 {strides = array<i32>} : memref<8x8xf32, #tpu.memory_space<vmem>>, vector<8x8xf32>,
    return
  }
  func.func @transform_0(%arg0: i32) -> (i32, i32) {
    %c0_i32 = arith.constant 0 : i32
    %c0_i32_0 = arith.constant 0 : i32
    return %arg0, %c0_i32 : i32, i32
  }
  func.func @transform_1(%arg0: i32) -> (i32, i32) {
    %c0_i32 = arith.constant 0 : i32
    %c0_i32_0 = arith.constant 0 : i32
    %c0_i32_1 = arith.constant 0 : i32
    return %c0_i32, %c0_i32_0 : i32, i32
  }
  func.func @transform_2(%arg0: i32) -> (i32, i32) {
    %c0_i32 = arith.constant 0 : i32
    %c0_i32_0 = arith.constant 0 : i32
    %c0_i32_1 = arith.constant 0 : i32
    return %c0_i32, %c0_i32_0 : i32, i32
  }
  func.func @transform_3(%arg0: i32) -> (i32, i32) {
    %c0_i32 = arith.constant 0 : i32
    %c0_i32_0 = arith.constant 0 : i32
    %c0_i32_1 = arith.constant 0 : i32
    return %c0_i32, %c0_i32_0 : i32, i32
  }
  func.func @transform_4(%arg0: i32) -> (i32, i32) {
    %c0_i32 = arith.constant 0 : i32
    %c0_i32_0 = arith.constant 0 : i32
    %c0_i32_1 = arith.constant 0 : i32
    return %c0_i32, %c0_i32_0 : i32, i32
  }
  func.func @transform_5(%arg0: i32) -> (i32, i32) {
    %c0_i32 = arith.constant 0 : i32
    %c0_i32_0 = arith.constant 0 : i32
    %c0_i32_1 = arith.constant 0 : i32
    return %c0_i32, %c0_i32_0 : i32, i32
  }
  func.func @transform_6(%arg0: i32) -> (i32, i32) {
    %c0_i32 = arith.constant 0 : i32
    %c0_i32_0 = arith.constant 0 : i32
    return %arg0, %c0_i32 : i32, i32
  }
}

</mosaic_0001>

<bundles_post_ra>
// kernel: net_forward.1
= control target key start
LH: loop header
LB: loop body
LE: loop exit
PB: predicated region body
PF: predicated region fallthrough
CT: control target
= control target key end

     0   :  { %vm944_vm0 = vcmask 490496   ;;  %vm948_vm1 = vcmask 1045504   ;;  %vm2283_vm2 = vmmov 0   ;;  %vm1703_vm3 = vcmask 64512   ;;  %s2934_s1 = inlined_call_operand.vmem [shape: bf16[700,384], index: 1, kind: input, shape index: {}]   ;;  %s2935_s0 = inlined_call_operand.vmem [shape: f32[8,700], index: 0, kind: input, shape index: {}]   ;;  %s2936_s2 = inlined_call_operand.vmem [shape: bf16[384,128], index: 2, kind: input, shape index: {}]   ;;  %s2937_s5 = inlined_call_operand.vmem [shape: f32[4,384], index: 5, kind: input, shape index: {}]   ;;  %s2938_s3 = inlined_call_operand.vmem [shape: bf16[128,128], index: 3, kind: input, shape index: {}]   ;;  %s2939_s4 = inlined_call_operand.vmem [shape: bf16[128,8], index: 4, kind: input, shape index: {}]   ;;  %s2940_s6 = inlined_call_operand.vmem [shape: f32[8,8], index: 6, kind: output, shape index: {}]  }
   0x1   :  { %v2061_v0 = vld [vmem:[%s2934_s1 + $0x4] ss:$12 sps:$4 sm:$0xff]   ;;  %v2063_v1 = vld [vmem:[%s2934_s1] ss:$12 sps:$4 sm:$0xff]   ;;  %v2064_v2 = vld [vmem:[%s2934_s1 + $0x1c] ss:$12 sps:$4 sm:$0xff]  }
   0x2   :  { %958 = vmatprep.subr.bf16.mxu0 %v2061_v0  ;;  %v2066_v3 = vld [vmem:[%s2934_s1 + $0x18] ss:$12 sps:$4 sm:$0xff]   ;;  %v2067_v4 = vld [vmem:[%s2934_s1 + $0x34] ss:$12 sps:$4 sm:$0xff]   ;;  %v2069_v5 = vld [vmem:[%s2934_s1 + $0x30] ss:$12 sps:$4 sm:$0xff]  }
   0x3   :  { %959 = vmatpush1.bf16.msra.mxu0 %v2063_v1  ;;  %v2070_v6 = vld [vmem:[%s2934_s1 + $0x4c] ss:$12 sps:$4 sm:$0xff]   ;;  %v2081_v7 = vld [vmem:[%s2934_s1 + $0xc8] ss:$12 sps:$4 sm:$0xff]   ;;  %v2073_v10 = vld [vmem:[%s2934_s1 + $0x64] ss:$12 sps:$4 sm:$0xff]  }
   0x4   :  { %960 = vmatprep.subr.bf16.mxu0 %v2064_v2  ;;  %v2072_v8 = vld [vmem:[%s2934_s1 + $0x48] ss:$12 sps:$4 sm:$0xff]   ;;  %1895 = vmatprep.subr.bf16.mxu1 %v2081_v7  ;;  %v2086_v11 = vld [vmem:[%s2934_s1 + $0xe0] ss:$12 sps:$4 sm:$0xff]   ;;  %v2091_v15 = vld [vmem:[%s2934_s1 + $0xf8] ss:$12 sps:$4 sm:$0xff]  }
   0x5   :  { %v2083_v9 = vld [vmem:[%s2934_s1 + $0x8] ss:$12 sps:$4 sm:$0xff]   ;;  %v2088_v12 = vld [vmem:[%s2934_s1 + $0x20] ss:$12 sps:$4 sm:$0xff]   ;;  %v2093_v16 = vld [vmem:[%s2934_s1 + $0x38] ss:$12 sps:$4 sm:$0xff]  }
   0x6   :  { %1896 = vmatpush3.bf16.msra.mxu1 %v2083_v9  ;;  %v2075_v13 = vld [vmem:[%s2934_s1 + $0x60] ss:$12 sps:$4 sm:$0xff]   ;;  %v2076_v14 = vld [vmem:[%s2934_s1 + $0x7c] ss:$12 sps:$4 sm:$0xff]   ;;  %v2078_v17 = vld [vmem:[%s2934_s1 + $0x78] ss:$12 sps:$4 sm:$0xff]  }
   0x7   :  { %961 = vmatpush1.bf16.msra.mxu0 %v2066_v3  ;;  %1897 = vmatprep.subr.bf16.mxu1 %v2086_v11  ;;  %v2096_v18 = vld [vmem:[%s2934_s1 + $0x110] ss:$12 sps:$4 sm:$0xff]   ;;  %v2079_v19 = vld [vmem:[%s2934_s1 + $0x94] ss:$12 sps:$4 sm:$0xff]   ;;  %v2084_v23 = vld [vmem:[%s2934_s1 + $0xac] ss:$12 sps:$4 sm:$0xff]  }
   0x8   :  { %962 = vmatprep.subr.bf16.mxu0 %v2067_v4  ;;  %v2098_v20 = vld [vmem:[%s2934_s1 + $0x50] ss:$12 sps:$4 sm:$0xff]   ;;  %v2101_v22 = vld [vmem:[%s2934_s1 + $0x128] ss:$12 sps:$4 sm:$0xff]   ;;  %v2106_v25 = vld [vmem:[%s2934_s1 + $0x140] ss:$12 sps:$4 sm:$0xff]  }
   0x9   :  { %v2082_v21 = vld [vmem:[%s2934_s1 + $0x90] ss:$12 sps:$4 sm:$0xff]   ;;  %v2103_v24 = vld [vmem:[%s2934_s1 + $0x68] ss:$12 sps:$4 sm:$0xff]   ;;  %v2108_v28 = vld [vmem:[%s2934_s1 + $0x80] ss:$12 sps:$4 sm:$0xff]  }
   0xa   :  { %1898 = vmatpush3.bf16.msra.mxu1 %v2088_v12  ;;  %v2087_v26 = vld [vmem:[%s2934_s1 + $0xa8] ss:$12 sps:$4 sm:$0xff]   ;;  %v2089_v27 = vld [vmem:[%s2934_s1 + $0xc4] ss:$12 sps:$4 sm:$0xff]   ;;  %v2092_v30 = vld [vmem:[%s2934_s1 + $0xc0] ss:$12 sps:$4 sm:$0xff]  }
   0xb   :  { %963 = vmatpush1.bf16.msra.mxu0 %v2069_v5  ;;  %1899 = vmatprep.subr.bf16.mxu1 %v2091_v15  ;;  %v2111_v29 = vld [vmem:[%s2934_s1 + $0x158] ss:$12 sps:$4 sm:$0xff]   ;;  %v2094_v31 = vld [vmem:[%s2934_s1 + $0xdc] ss:$12 sps:$4 sm:$0xff]   ;;  %v2099_v36 = vld [vmem:[%s2934_s1 + $0xf4] ss:$12 sps:$4 sm:$0xff]  }
   0xc   :  { %964 = vmatprep.subr.bf16.mxu0 %v2070_v6  ;;  %v2113_v32 = vld [vmem:[%s2934_s1 + $0x98] ss:$12 sps:$4 sm:$0xff]   ;;  %v2116_v33 = vld [vmem:[%s2934_s1 + $0x170] ss:$12 sps:$4 sm:$0xff]   ;;  %v27_v35 = vld [vmem:[%s2935_s0 + $0x8] sm:$0xff] }
   0xd   :  { %v2097_v34 = vld [vmem:[%s2934_s1 + $0xd8] ss:$12 sps:$4 sm:$0xff]   ;;  %v33_v37 = vpack.c.bf16 %v27_v35, %v27_v35  ;;  %v2118_v38 = vld [vmem:[%s2934_s1 + $0xb0] ss:$12 sps:$4 sm:$0xff]   ;;  %v2121_v40 = vld [vmem:[%s2934_s1 + $0x248] ss:$12 sps:$4 sm:$0xff]  }
   0xe   :  { %1900 = vmatpush3.bf16.msra.mxu1 %v2093_v16  ;;  %v26_v39 = vld [vmem:[%s2935_s0] sm:$0xff]  ;;  %v2102_v41 = vld [vmem:[%s2934_s1 + $0xf0] ss:$12 sps:$4 sm:$0xff]   ;;  %v2104_v42 = vld [vmem:[%s2934_s1 + $0x10c] ss:$12 sps:$4 sm:$0xff]   ;;  %v2281_v16 = vmov 0  }
   0xf   :  { %965 = vmatpush1.bf16.msra.mxu0 %v2072_v8  ;;  %1901 = vmatprep.subr.bf16.mxu1 %v2096_v18  ;;  %v32_v43 = vpack.c.bf16 %v26_v39, %v26_v39  ;;  %v2123_v44 = vld [vmem:[%s2934_s1 + $0x188] ss:$12 sps:$4 sm:$0xff]   ;;  %v2126_v45 = vld [vmem:[%s2934_s1 + $0x260] ss:$12 sps:$4 sm:$0xff]   ;;  %v2109_v47 = vld [vmem:[%s2934_s1 + $0x124] ss:$12 sps:$4 sm:$0xff]  }
  0x10   :  { %966 = vmatprep.subr.bf16.mxu0 %v2073_v10  ;;  %1113 = vmatprep.mubr.bf16.mxu1 %v33_v37  ;;  %v2107_v46 = vld [vmem:[%s2934_s1 + $0x108] ss:$12 sps:$4 sm:$0xff]   ;;  %v2128_v48 = vld [vmem:[%s2934_s1 + $0x1a0] ss:$12 sps:$4 sm:$0xff]   ;;  %v2132_v49 = vld [vmem:[%s2934_s1 + $0x278] ss:$12 sps:$4 sm:$0xff]  }
  0x11   :  { %990 = vmatprep.mubr.bf16.mxu0 %v33_v37  ;;  %v2112_v50 = vld [vmem:[%s2934_s1 + $0x120] ss:$12 sps:$4 sm:$0xff]   ;;  %v2114_v51 = vld [vmem:[%s2934_s1 + $0x13c] ss:$12 sps:$4 sm:$0xff]   ;;  %v2133_v52 = vld [vmem:[%s2934_s1 + $0x1b8] ss:$12 sps:$4 sm:$0xff]  }
  0x12   :  { %1902 = vmatpush3.bf16.msra.mxu1 %v2098_v20  ;;  %v2137_v53 = vld [vmem:[%s2934_s1 + $0x290] ss:$12 sps:$4 sm:$0xff]   ;;  %v2117_v54 = vld [vmem:[%s2934_s1 + $0x138] ss:$12 sps:$4 sm:$0xff]   ;;  %v2119_v55 = vld [vmem:[%s2934_s1 + $0x154] ss:$12 sps:$4 sm:$0xff]  }
  0x13   :  { %967 = vmatpush1.bf16.msra.mxu0 %v2075_v13  ;;  %1903 = vmatprep.subr.bf16.mxu1 %v2101_v22  ;;  %v2138_v56 = vld [vmem:[%s2934_s1 + $0x1d0] ss:$12 sps:$4 sm:$0xff]   ;;  %v2142_v57 = vld [vmem:[%s2934_s1 + $0x2a8] ss:$12 sps:$4 sm:$0xff]   ;;  %v2124_v59 = vld [vmem:[%s2934_s1 + $0x16c] ss:$12 sps:$4 sm:$0xff]  }
  0x14   :  { %968 = vmatprep.subr.bf16.mxu0 %v2076_v14  ;;  %v2122_v58 = vld [vmem:[%s2934_s1 + $0x150] ss:$12 sps:$4 sm:$0xff]   ;;  %v2143_v60 = vld [vmem:[%s2934_s1 + $0x1e8] ss:$12 sps:$4 sm:$0xff]   ;;  %v2147_v61 = vld [vmem:[%s2934_s1 + $0x2c0] ss:$12 sps:$4 sm:$0xff]  }
  0x15   :  { %v2127_v62 = vld [vmem:[%s2934_s1 + $0x168] ss:$12 sps:$4 sm:$0xff]   ;;  %v2131_v63 = vld [vmem:[%s2934_s1 + $0x184] ss:$12 sps:$4 sm:$0xff]   ;;  %v2148_v0 = vld [vmem:[%s2934_s1 + $0x200] ss:$12 sps:$4 sm:$0xff]  }
  0x16   :  { %1904 = vmatpush3.bf16.msra.mxu1 %v2103_v24  ;;  %v2152_v1 = vld [vmem:[%s2934_s1 + $0x2d8] ss:$12 sps:$4 sm:$0xff]   ;;  %v2129_v2 = vld [vmem:[%s2934_s1 + $0x180] ss:$12 sps:$4 sm:$0xff]   ;;  %v2136_v4 = vld [vmem:[%s2934_s1 + $0x19c] ss:$12 sps:$4 sm:$0xff]  }
  0x17   :  { %969 = vmatpush1.bf16.msra.mxu0 %v2078_v17  ;;  %1905 = vmatprep.subr.bf16.mxu1 %v2106_v25  ;;  %v29_v3 = vld [vmem:[%s2935_s0 + $0x18] sm:$0xff]  ;;  %v2141_v9 = vld [vmem:[%s2934_s1 + $0x1b4] ss:$12 sps:$4 sm:$0xff]   ;;  %v2151_v18 = vld [vmem:[%s2934_s1 + $0x1e4] ss:$12 sps:$4 sm:$0xff]  }
  0x18   :  { %970 = vmatprep.subr.bf16.mxu0 %v2079_v19  ;;  %v35_v5 = vpack.c.bf16 %v29_v3, %v29_v3  ;;  %v2153_v6 = vld [vmem:[%s2934_s1 + $0x218] ss:$12 sps:$4 sm:$0xff]   ;;  %v2157_v7 = vld [vmem:[%s2934_s1 + $0x2f0] ss:$12 sps:$4 sm:$0xff]   ;;  %v2162_v15 = vld [vmem:[%s2934_s1 + $0x308] ss:$12 sps:$4 sm:$0xff]  }
  0x19   :  { %v2134_v8 = vld [vmem:[%s2934_s1 + $0x198] ss:$12 sps:$4 sm:$0xff]   ;;  %v2158_v10 = vld [vmem:[%s2934_s1 + $0x230] ss:$12 sps:$4 sm:$0xff]   ;;  %v2144_v17 = vld [vmem:[%s2934_s1 + $0x1c8] ss:$12 sps:$4 sm:$0xff]  }
  0x1a   :  { %1906 = vmatpush3.bf16.msra.mxu1 %v2108_v28  ;;  %v28_v11 = vld [vmem:[%s2935_s0 + $0x10] sm:$0xff]  ;;  %v2146_v13 = vld [vmem:[%s2934_s1 + $0x1cc] ss:$12 sps:$4 sm:$0xff]   ;;  %v2173_v35 = vld [vmem:[%s2934_s1 + $0x25c] ss:$12 sps:$4 sm:$0xff]  }
  0x1b   :  { %971 = vmatpush1.bf16.msra.mxu0 %v2082_v21  ;;  %1907 = vmatprep.subr.bf16.mxu1 %v2111_v29  ;;  %v2139_v12 = vld [vmem:[%s2934_s1 + $0x1b0] ss:$12 sps:$4 sm:$0xff]   ;;  %v2544_v14 = vpack.c.bf16 %v28_v11, %v28_v11  ;;  %v2166_v19 = vld [vmem:[%s2934_s1 + $0x320] ss:$12 sps:$4 sm:$0xff]   ;;  %v2170_v22 = vld [vmem:[%s2934_s1 + $0x338] ss:$12 sps:$4 sm:$0xff]  }
  0x1c   :  { %972 = vmatprep.subr.bf16.mxu0 %v2084_v23  ;;  %v2149_v20 = vld [vmem:[%s2934_s1 + $0x1e0] ss:$12 sps:$4 sm:$0xff]   ;;  %v2156_v21 = vld [vmem:[%s2934_s1 + $0x1fc] ss:$12 sps:$4 sm:$0xff]   ;;  %v2154_v23 = vld [vmem:[%s2934_s1 + $0x1f8] ss:$12 sps:$4 sm:$0xff]  }
  0x1d   :  { %v2161_v24 = vld [vmem:[%s2934_s1 + $0x214] ss:$12 sps:$4 sm:$0xff]   ;;  %v2174_v25 = vld [vmem:[%s2934_s1 + $0x350] ss:$12 sps:$4 sm:$0xff]   ;;  %v31_v29 = vld [vmem:[%s2935_s0 + $0x28] sm:$0xff] }
  0x1e   :  { %1908 = vmatpush3.bf16.msra.mxu1 %v2113_v32  ;;  %v2178_v28 = vld [vmem:[%s2934_s1 + $0x368] ss:$12 sps:$4 sm:$0xff]   ;;  %v2169_v32 = vld [vmem:[%s2934_s1 + $0x244] ss:$12 sps:$4 sm:$0xff]   ;;  %v2213_v3 = vld [vmem:[%s2934_s1 + $0x360] ss:$12 sps:$4 sm:$0xff]  }
  0x1f   :  { %973 = vmatpush1.bf16.msra.mxu0 %v2087_v26  ;;  %1909 = vmatprep.subr.bf16.mxu1 %v2116_v33  ;;  %v2159_v26 = vld [vmem:[%s2934_s1 + $0x210] ss:$12 sps:$4 sm:$0xff]   ;;  %v2182_v33 = vld [vmem:[%s2934_s1 + $0x380] ss:$12 sps:$4 sm:$0xff]   ;;  %v2171_v37 = vld [vmem:[%s2934_s1 + $0x258] ss:$12 sps:$4 sm:$0xff]  }
  0x20   :  { %974 = vmatprep.subr.bf16.mxu0 %v2089_v27  ;;  %v2165_v27 = vld [vmem:[%s2934_s1 + $0x22c] ss:$12 sps:$4 sm:$0xff]   ;;  %v2190_v39 = vld [vmem:[%s2934_s1 + $0x3b0] ss:$12 sps:$4 sm:$0xff]  }
  0x21   :  { %v2225_v11 = vld [vmem:[%s2934_s1 + $0x3c0] ss:$12 sps:$4 sm:$0xff]  }
  0x22   :  { %1910 = vmatpush3.bf16.msra.mxu1 %v2118_v38  ;;  %v2177_v38 = vld [vmem:[%s2934_s1 + $0x274] ss:$12 sps:$4 sm:$0xff]  }
  0x23   :  { %975 = vmatpush1.bf16.msra.mxu0 %v2092_v30  ;;  %1917 = vmatprep.subr.bf16.mxu1 %v2121_v40  ;;  %v2163_v30 = vld [vmem:[%s2934_s1 + $0x228] ss:$12 sps:$4 sm:$0xff]   ;;  %v2175_v40 = vld [vmem:[%s2934_s1 + $0x270] ss:$12 sps:$4 sm:$0xff]  }
  0x24   :  { %976 = vmatprep.subr.bf16.mxu0 %v2094_v31  ;;  %v2597_v31 = vpack.c.bf16 %v31_v29, %v31_v29  ;;  %v2247_v29 = vld [vmem:[%s2936_s2 + $0x68] sm:$0xff]  }
  0x25   :  { %1114 = vmatmul.mubr.bf16.vlgmr.msra.gmra.mrb[0].mxu1 %v32_v43 }
  0x26   :  { %1918 = vmatpush3.bf16.msra.mxu1 %v2123_v44  ;;  %1153 = vmatprep.mubr.bf16.mxu1 %v35_v5  ;;  %v2185_v44 = vld [vmem:[%s2934_s1 + $0x2a4] ss:$12 sps:$4 sm:$0xff]  }
  0x27   :  { %977 = vmatpush1.bf16.msra.mxu0 %v2097_v34  ;;  %1919 = vmatprep.subr.bf16.mxu1 %v2126_v45  ;;  %v2167_v34 = vld [vmem:[%s2934_s1 + $0x240] ss:$12 sps:$4 sm:$0xff]  }
  0x28   :  { %978 = vmatprep.subr.bf16.mxu0 %v2099_v36  ;;  %v2186_v36 = vld [vmem:[%s2934_s1 + $0x398] ss:$12 sps:$4 sm:$0xff]   ;;  %v2198_v45 = vld [vmem:[%s2934_s1 + $0x3e0] ss:$12 sps:$4 sm:$0xff]  }
  0x2a   :  { %1920 = vmatpush3.bf16.msra.mxu1 %v2128_v48  ;;  %v2202_v48 = vld [vmem:[%s2934_s1 + $0x3f8] ss:$12 sps:$4 sm:$0xff]  }
  0x2b   :  { %979 = vmatpush1.bf16.msra.mxu0 %v2102_v41  ;;  %1921 = vmatprep.subr.bf16.mxu1 %v2132_v49  ;;  %v2181_v41 = vld [vmem:[%s2934_s1 + $0x28c] ss:$12 sps:$4 sm:$0xff]   ;;  %v2206_v49 = vld [vmem:[%s2934_s1 + $0x410] ss:$12 sps:$4 sm:$0x3f]  }
  0x2c   :  { %980 = vmatprep.subr.bf16.mxu0 %v2104_v42  ;;  %v2194_v42 = vld [vmem:[%s2934_s1 + $0x3c8] ss:$12 sps:$4 sm:$0xff]  }
  0x2e   :  { %1922 = vmatpush3.bf16.msra.mxu1 %v2133_v52  ;;  %v30_v52 = vld [vmem:[%s2935_s0 + $0x20] sm:$0xff] }
  0x2f   :  { %981 = vmatpush1.bf16.msra.mxu0 %v2107_v46  ;;  %1923 = vmatprep.subr.bf16.mxu1 %v2137_v53  ;;  %v2183_v46 = vld [vmem:[%s2934_s1 + $0x2a0] ss:$12 sps:$4 sm:$0xff]   ;;  %v956_v53 = vsel %vm948_vm1, %v2206_v49, 0 }
  0x30   :  { %982 = vmatprep.subr.bf16.mxu0 %v2109_v47  ;;  %v2189_v47 = vld [vmem:[%s2934_s1 + $0x2bc] ss:$12 sps:$4 sm:$0xff]  }
  0x32   :  { %1924 = vmatpush3.bf16.msra.mxu1 %v2138_v56  ;;  %v36_v56 = vpack.c.bf16 %v30_v52, %v30_v52 }
  0x33   :  { %983 = vmatpush1.bf16.msra.mxu0 %v2112_v50  ;;  %1925 = vmatprep.subr.bf16.mxu1 %v2142_v57  ;;  %v2187_v50 = vld [vmem:[%s2934_s1 + $0x2b8] ss:$12 sps:$4 sm:$0xff]   ;;  %v2195_v57 = vld [vmem:[%s2934_s1 + $0x2e8] ss:$12 sps:$4 sm:$0xff]  }
  0x34   :  { %984 = vmatprep.subr.bf16.mxu0 %v2114_v51  ;;  %v2193_v51 = vld [vmem:[%s2934_s1 + $0x2d4] ss:$12 sps:$4 sm:$0xff]  }
  0x36   :  { %1926 = vmatpush3.bf16.msra.mxu1 %v2143_v60  ;;  %v2205_v60 = vld [vmem:[%s2934_s1 + $0x31c] ss:$12 sps:$4 sm:$0xff]  }
  0x37   :  { %985 = vmatpush1.bf16.msra.mxu0 %v2117_v54  ;;  %1927 = vmatprep.subr.bf16.mxu1 %v2147_v61  ;;  %v2191_v54 = vld [vmem:[%s2934_s1 + $0x2d0] ss:$12 sps:$4 sm:$0xff]   ;;  %v2203_v61 = vld [vmem:[%s2934_s1 + $0x318] ss:$12 sps:$4 sm:$0xff]  }
  0x38   :  { %986 = vmatprep.subr.bf16.mxu0 %v2119_v55  ;;  %v2197_v55 = vld [vmem:[%s2934_s1 + $0x2ec] ss:$12 sps:$4 sm:$0xff]  }
  0x3a   :  { %1928 = vmatpush3.bf16.msra.mxu1 %v2148_v0  ;;  %v2212_v0 = vld [vmem:[%s2934_s1 + $0x34c] ss:$12 sps:$4 sm:$0xff]  }
  0x3b   :  { %987 = vmatpush1.bf16.msra.mxu0 %v2122_v58  ;;  %1929 = vmatprep.subr.bf16.mxu1 %v2152_v1  ;;  %v2201_v58 = vld [vmem:[%s2934_s1 + $0x304] ss:$12 sps:$4 sm:$0xff]   ;;  %v2210_v1 = vld [vmem:[%s2934_s1 + $0x348] ss:$12 sps:$4 sm:$0xff]  }
  0x3c   :  { %988 = vmatprep.subr.bf16.mxu0 %v2124_v59  ;;  %v2199_v59 = vld [vmem:[%s2934_s1 + $0x300] ss:$12 sps:$4 sm:$0xff]  }
  0x3e   :  { %1930 = vmatpush3.bf16.msra.mxu1 %v2153_v6  ;;  %v2221_v6 = vld [vmem:[%s2934_s1 + $0x394] ss:$12 sps:$4 sm:$0xff]  }
  0x3f   :  { %989 = vmatpush1.bf16.msra.mxu0 %v2127_v62  ;;  %1931 = vmatprep.subr.bf16.mxu1 %v2157_v7  ;;  %v2209_v62 = vld [vmem:[%s2934_s1 + $0x334] ss:$12 sps:$4 sm:$0xff]   ;;  %v2219_v7 = vld [vmem:[%s2934_s1 + $0x390] ss:$12 sps:$4 sm:$0xff]  }
  0x40   :  { %999 = vmatprep.subr.bf16.mxu0 %v2131_v63  ;;  %v2207_v63 = vld [vmem:[%s2934_s1 + $0x330] ss:$12 sps:$4 sm:$0xff]  }
  0x42   :  { %991 = vmatmul.mubr.bf16.vlgmr.msra.gmra.mrb[0].mxu0 %v32_v43  ;;  %1932 = vmatpush3.bf16.msra.mxu1 %v2158_v10  ;;  %v2179_v43 = vld [vmem:[%s2934_s1 + $0x288] ss:$12 sps:$4 sm:$0xff]   ;;  %v2227_v10 = vld [vmem:[%s2934_s1 + $0x3c4] ss:$12 sps:$4 sm:$0xff]  }
  0x43   :  { %1000 = vmatpush1.bf16.msra.mxu0 %v2129_v2  ;;  %1031 = vmatprep.mubr.bf16.mxu0 %v35_v5  ;;  %v2215_v2 = vld [vmem:[%s2934_s1 + $0x364] ss:$12 sps:$4 sm:$0xff]  }
  0x44   :  { %1001 = vmatprep.subr.bf16.mxu0 %v2136_v4  ;;  %1161 = vmatprep.subr.bf16.mxu1 %v2281_v16  ;;  %v2218_v4 = vld [vmem:[%s2934_s1 + $0x37c] ss:$12 sps:$4 sm:$0xff]   ;;  %v2216_v5 = vld [vmem:[%s2934_s1 + $0x378] ss:$12 sps:$4 sm:$0xff]  }
  0x45   :  { %1154 = vmatmul.mubr.bf16.vlgmr.msra.gmra.mrb[4].mxu1 %v2544_v14 }
  0x46   :  { %1162 = vmatpush1.bf16.msra.mxu1 %v2162_v15  ;;  %1854 = vmatprep.mubr.msk.bf16.mxu1 %vm944_vm0, %v2597_v31  ;;  %v2231_v15 = vld [vmem:[%s2934_s1 + $0x3f0] ss:$12 sps:$4 sm:$0xff]  }
  0x47   :  { %1002 = vmatpush1.bf16.msra.mxu0 %v2134_v8  ;;  %1163 = vmatprep.subr.bf16.mxu1 %v2281_v16  ;;  %v2224_v8 = vld [vmem:[%s2934_s1 + $0x3ac] ss:$12 sps:$4 sm:$0xff]  }
  0x48   :  { %1003 = vmatprep.subr.bf16.mxu0 %v2141_v9  ;;  %v2222_v9 = vld [vmem:[%s2934_s1 + $0x3a8] ss:$12 sps:$4 sm:$0xff]  }
  0x4a   :  { %1164 = vmatpush1.bf16.msra.mxu1 %v2166_v19  ;;  %v2237_v19 = vld [vmem:[%s2936_s2 + $0x40] sm:$0xff]  }
  0x4b   :  { %1004 = vmatpush1.bf16.msra.mxu0 %v2139_v12  ;;  %1165 = vmatprep.subr.bf16.mxu1 %v2281_v16  ;;  %v2230_v12 = vld [vmem:[%s2934_s1 + $0x3dc] ss:$12 sps:$4 sm:$0xff]  }
  0x4c   :  { %1005 = vmatprep.subr.bf16.mxu0 %v2146_v13  ;;  %v2228_v13 = vld [vmem:[%s2934_s1 + $0x3d8] ss:$12 sps:$4 sm:$0xff]  }
  0x4e   :  { %1166 = vmatpush1.bf16.msra.mxu1 %v2170_v22  ;;  %v2240_v22 = vld [vmem:[%s2936_s2 + $0x8] sm:$0xff]  }
  0x4f   :  { %1006 = vmatpush1.bf16.msra.mxu0 %v2144_v17  ;;  %1167 = vmatprep.subr.bf16.mxu1 %v2281_v16  ;;  %v2236_v17 = vld [vmem:[%s2934_s1 + $0x408] ss:$12 sps:$4 sm:$0x3f]  }
  0x50   :  { %1007 = vmatprep.subr.bf16.mxu0 %v2151_v18  ;;  %v950_v18 = vsel %vm948_vm1, %v2236_v17, 0  ;;  %v2259_v17 = vld [vmem:[%s2936_s2 + $0xb0] sm:$0xff]  }
  0x52   :  { %1168 = vmatpush1.bf16.msra.mxu1 %v2174_v25  ;;  %v2243_v25 = vld [vmem:[%s2936_s2 + $0x58] sm:$0xff]  }
  0x53   :  { %1008 = vmatpush1.bf16.msra.mxu0 %v2149_v20  ;;  %1169 = vmatprep.subr.bf16.mxu1 %v2281_v16  ;;  %v2238_v20 = vld [vmem:[%s2936_s2] sm:$0xff]  }
  0x54   :  { %1009 = vmatprep.subr.bf16.mxu0 %v2156_v21  ;;  %v2239_v21 = vld [vmem:[%s2936_s2 + $0x48] sm:$0xff]  }
  0x56   :  { %1170 = vmatpush1.bf16.msra.mxu1 %v2178_v28  ;;  %v2246_v28 = vld [vmem:[%s2936_s2 + $0x20] sm:$0xff]  }
  0x57   :  { %1010 = vmatpush1.bf16.msra.mxu0 %v2154_v23  ;;  %1171 = vmatprep.subr.bf16.mxu1 %v2281_v16  ;;  %v2241_v23 = vld [vmem:[%s2936_s2 + $0x50] sm:$0xff]  }
  0x58   :  { %1011 = vmatprep.subr.bf16.mxu0 %v2161_v24  ;;  %v2242_v24 = vld [vmem:[%s2936_s2 + $0x10] sm:$0xff]  }
  0x5a   :  { %1172 = vmatpush1.bf16.msra.mxu1 %v2182_v33 }
  0x5b   :  { %1012 = vmatpush1.bf16.msra.mxu0 %v2159_v26  ;;  %1173 = vmatprep.subr.bf16.mxu1 %v2281_v16  ;;  %v2244_v26 = vld [vmem:[%s2936_s2 + $0x18] sm:$0xff]  }
  0x5c   :  { %1013 = vmatprep.subr.bf16.mxu0 %v2165_v27  ;;  %v2245_v27 = vld [vmem:[%s2936_s2 + $0x60] sm:$0xff]  }
  0x5e   :  { %1174 = vmatpush1.bf16.msra.mxu1 %v2186_v36  ;;  %v2249_v36 = vld [vmem:[%s2936_s2 + $0x70] sm:$0xff]  }
  0x5f   :  { %1014 = vmatpush1.bf16.msra.mxu0 %v2163_v30  ;;  %1175 = vmatprep.subr.bf16.mxu1 %v2281_v16  ;;  %v2248_v30 = vld [vmem:[%s2936_s2 + $0x28] sm:$0xff]  }
  0x60   :  { %1015 = vmatprep.subr.bf16.mxu0 %v2169_v32 }
  0x62   :  { %1176 = vmatpush1.bf16.msra.mxu1 %v2190_v39  ;;  %v2252_v39 = vld [vmem:[%s2936_s2 + $0x38] sm:$0xff]  }
  0x63   :  { %1016 = vmatpush1.bf16.msra.mxu0 %v2167_v34  ;;  %1177 = vmatprep.subr.bf16.mxu1 %v2281_v16 }
  0x64   :  { %1017 = vmatprep.subr.bf16.mxu0 %v2173_v35 }
  0x66   :  { %1178 = vmatpush1.bf16.msra.mxu1 %v2194_v42 }
  0x67   :  { %1018 = vmatpush1.bf16.msra.mxu0 %v2171_v37  ;;  %1179 = vmatprep.subr.bf16.mxu1 %v2281_v16  ;;  %v2250_v37 = vld [vmem:[%s2936_s2 + $0x30] sm:$0xff]  }
  0x68   :  { %1019 = vmatprep.subr.bf16.mxu0 %v2177_v38  ;;  %v2251_v38 = vld [vmem:[%s2936_s2 + $0x78] sm:$0xff]  }
  0x6a   :  { %1180 = vmatpush1.bf16.msra.mxu1 %v2198_v45 }
  0x6b   :  { %1020 = vmatpush1.bf16.msra.mxu0 %v2175_v40  ;;  %1181 = vmatprep.subr.bf16.mxu1 %v2281_v16  ;;  %v216_v40 = vlaneseq }
  0x6c   :  { %1021 = vmatprep.subr.bf16.mxu0 %v2181_v41  ;;  %v2282_v41 = vmov 0.0  }
  0x6d   :  { %v2808_v42 = vshrl.u32 %v216_v40, 7 }
  0x6e   :  { %1182 = vmatpush1.bf16.msra.mxu1 %v2202_v48 }
  0x6f   :  { %1022 = vmatpush1.bf16.msra.mxu0 %v2179_v43  ;;  %1183 = vmatprep.subr.bf16.mxu1 %v2281_v16  ;;  %v2234_v16 = vld [vmem:[%s2934_s1 + $0x40c] ss:$12 sps:$4 sm:$0x3f]   ;;  %v218_v43 = vsub.s32 0, %v2808_v42  ;;  %v1257_v40 = vsub.s32 1, %v2808_v42 }
  0x70   :  { %1023 = vmatprep.subr.bf16.mxu0 %v2185_v44  ;;  %v25_v44 = vld [vmem:[%s2937_s5 + $0x8] sm:$0xf] }
  0x71   :  { %v227_v45 = vrot.slane %v25_v44, %v218_v43 }
  0x72   :  { %1184 = vmatpush1.bf16.msra.mxu1 %v956_v53 }
  0x73   :  { %1024 = vmatpush1.bf16.msra.mxu0 %v2183_v46  ;;  %1939 = vmatprep.subr.bf16.mxu1 %v2237_v19  ;;  %v242_v46 = vrot.slane %v227_v45, %v218_v43 }
  0x74   :  { %1025 = vmatprep.subr.bf16.mxu0 %v2189_v47 }
  0x75   :  { %1194 = vmatmul.mubr.bf16.vlgmr.msra.gmra.mrb[8].mxu1 %v36_v56 }
  0x76   :  { %1940 = vmatpush3.bf16.msra.mxu1 %v2238_v20 }
  0x77   :  { %1026 = vmatpush1.bf16.msra.mxu0 %v2187_v50  ;;  %1941 = vmatprep.subr.bf16.mxu1 %v2239_v21  ;;  %v2261_v21 = vld [vmem:[%s2938_s3] sm:$0xff]  }
  0x78   :  { %1027 = vmatprep.subr.bf16.mxu0 %v2193_v51 }
  0x7a   :  { %1942 = vmatpush3.bf16.msra.mxu1 %v2240_v22  ;;  %v2262_v22 = vld [vmem:[%s2938_s3 + $0x8] sm:$0xff]  }
  0x7b   :  { %1028 = vmatpush1.bf16.msra.mxu0 %v2191_v54  ;;  %1943 = vmatprep.subr.bf16.mxu1 %v2241_v23  ;;  %v2263_v23 = vld [vmem:[%s2938_s3 + $0x10] sm:$0xff]  }
  0x7c   :  { %1029 = vmatprep.subr.bf16.mxu0 %v2197_v55 }
  0x7e   :  { %1944 = vmatpush3.bf16.msra.mxu1 %v2242_v24  ;;  %v2264_v24 = vld [vmem:[%s2938_s3 + $0x18] sm:$0xff]  }
  0x7f   :  { %1030 = vmatpush1.bf16.msra.mxu0 %v2195_v57  ;;  %1945 = vmatprep.subr.bf16.mxu1 %v2243_v25  ;;  %v2265_v25 = vld [vmem:[%s2938_s3 + $0x20] sm:$0xff]  }
  0x80   :  { %1040 = vmatprep.subr.bf16.mxu0 %v2201_v58 }
  0x82   :  { %1032 = vmatmul.mubr.bf16.vlgmr.msra.gmra.mrb[0].mxu0 %v2544_v14  ;;  %v2233_v14 = vld [vmem:[%s2934_s1 + $0x3f4] ss:$12 sps:$4 sm:$0xff]   ;;  %1946 = vmatpush3.bf16.msra.mxu1 %v2244_v26  ;;  %v2266_v26 = vld [vmem:[%s2938_s3 + $0x28] sm:$0xff]  }
  0x83   :  { %1041 = vmatpush1.bf16.msra.mxu0 %v2199_v59  ;;  %1853 = vmatprep.mubr.msk.bf16.mxu0 %vm944_vm0, %v2597_v31  ;;  %v2819_v59 = vld [vmem:[%s2937_s5] sm:$0xff] }
  0x84   :  { %1042 = vmatprep.subr.bf16.mxu0 %v2205_v60  ;;  %1947 = vmatprep.subr.bf16.mxu1 %v2245_v27  ;;  %v222_v60 = vsub.s32 4, %v2808_v42  ;;  %v2267_v27 = vld [vmem:[%s2938_s3 + $0x30] sm:$0xff]  }
  0x86   :  { %1948 = vmatpush3.bf16.msra.mxu1 %v2246_v28  ;;  %v2268_v28 = vld [vmem:[%s2938_s3 + $0x38] sm:$0xff]  }
  0x87   :  { %1043 = vmatpush1.bf16.msra.mxu0 %v2203_v61  ;;  %1949 = vmatprep.subr.bf16.mxu1 %v2247_v29  ;;  %v219_v61 = vrot.slane %v2819_v59, %v218_v43  ;;  %v2269_v29 = vld [vmem:[%s2939_s4] sm:$0xff]  }
  0x88   :  { %1044 = vmatprep.subr.bf16.mxu0 %v2209_v62  ;;  %v223_v62 = vrot.slane %v2819_v59, %v222_v60 }
  0x8a   :  { %1950 = vmatpush3.bf16.msra.mxu1 %v2248_v30  ;;  %v2270_v30 = vld [vmem:[%s2939_s4 + $0x8] sm:$0xff]  }
  0x8b   :  { %1045 = vmatpush1.bf16.msra.mxu0 %v2207_v63  ;;  %1951 = vmatprep.subr.bf16.mxu1 %v2249_v36  ;;  %v234_v63 = vrot.slane %v219_v61, %v218_v43 }
  0x8c   :  { %1046 = vmatprep.subr.bf16.mxu0 %v2212_v0  ;;  %v238_v0 = vrot.slane %v223_v62, %v218_v43  ;;  %v1258_v43 = vrot.slane %v2819_v59, %v1257_v40 }
  0x8e   :  { %1952 = vmatpush3.bf16.msra.mxu1 %v2250_v37 }
  0x8f   :  { %1047 = vmatpush1.bf16.msra.mxu0 %v2210_v1  ;;  %1953 = vmatprep.subr.bf16.mxu1 %v2251_v38 }
  0x90   :  { %1048 = vmatprep.subr.bf16.mxu0 %v2215_v2 }
  0x92   :  { %1954 = vmatpush3.bf16.msra.mxu1 %v2252_v39 }
  0x93   :  { %1049 = vmatpush1.bf16.msra.mxu0 %v2213_v3  ;;  %1988 = vmatprep.subr.bf16.mxu1 %v2282_v41 }
  0x94   :  { %1050 = vmatprep.subr.bf16.mxu0 %v2218_v4 }
  0x97   :  { %1051 = vmatpush1.bf16.msra.mxu0 %v2216_v5 }
  0x98   :  { %1052 = vmatprep.subr.bf16.mxu0 %v2221_v6 }
  0x9b   :  { %1053 = vmatpush1.bf16.msra.mxu0 %v2219_v7 }
  0x9c   :  { %1054 = vmatprep.subr.bf16.mxu0 %v2224_v8 }
  0x9f   :  { %1055 = vmatpush1.bf16.msra.mxu0 %v2222_v9 }
  0xa0   :  { %1056 = vmatprep.subr.bf16.mxu0 %v2227_v10  ;;  %v2253_v10 = vld [vmem:[%s2936_s2 + $0x80] sm:$0xff]  }
  0xa3   :  { %1057 = vmatpush1.bf16.msra.mxu0 %v2225_v11 }
  0xa4   :  { %1058 = vmatprep.subr.bf16.mxu0 %v2230_v12  ;;  %v2254_v12 = vld [vmem:[%s2936_s2 + $0x88] sm:$0xff]  }
  0xa7   :  { %1059 = vmatpush1.bf16.msra.mxu0 %v2228_v13  ;;  %v2255_v13 = vld [vmem:[%s2936_s2 + $0x90] sm:$0xff]  }
  0xa8   :  { %1060 = vmatprep.subr.bf16.mxu0 %v2233_v14  ;;  %v2256_v14 = vld [vmem:[%s2936_s2 + $0x98] sm:$0xff]  }
  0xab   :  { %1061 = vmatpush1.bf16.msra.mxu0 %v2231_v15  ;;  %v2257_v15 = vld [vmem:[%s2936_s2 + $0xa0] sm:$0xff]  }
  0xac   :  { %1852 = vmatprep.subr.msk.bf16.mxu0 %vm948_vm1, %v2234_v16  ;;  %v2258_v16 = vld [vmem:[%s2936_s2 + $0xa8] sm:$0xff]  }
  0xaf   :  { %1063 = vmatpush1.bf16.msra.mxu0 %v950_v18  ;;  %v2260_v18 = vld [vmem:[%s2936_s2 + $0xb8] sm:$0xff]  }
  0xb0   :  { %2008 = vmatprep.subr.bf16.mxu0 %v2282_v41 }
  0xb2   :  { %1073 = vmatmul.mubr.bf16.vlgmr.msra.gmra.mrb[0].mxu0 %v36_v56 }
  0xb3   :  { %2024 = vmatprep.mubr.msk.bf16.mxu0 %vm2283_vm2, %v2282_v41  ;;  %2009 = vmatpush3.bf16.msra.mxu0 %v2261_v21 }
  0xb4   :  { %2010 = vmatprep.subr.bf16.mxu0 %v2282_v41 }
  0xb7   :  { %2011 = vmatpush3.bf16.msra.mxu0 %v2262_v22 }
  0xb8   :  { %2012 = vmatprep.subr.bf16.mxu0 %v2282_v41 }
  0xbb   :  { %2013 = vmatpush3.bf16.msra.mxu0 %v2263_v23 }
  0xbc   :  { %2014 = vmatprep.subr.bf16.mxu0 %v2282_v41 }
  0xbf   :  { %2015 = vmatpush3.bf16.msra.mxu0 %v2264_v24 }
  0xc0   :  { %2016 = vmatprep.subr.bf16.mxu0 %v2282_v41 }
  0xc3   :  { %2017 = vmatpush3.bf16.msra.mxu0 %v2265_v25 }
  0xc4   :  { %2018 = vmatprep.subr.bf16.mxu0 %v2282_v41 }
  0xc7   :  { %2019 = vmatpush3.bf16.msra.mxu0 %v2266_v26 }
  0xc8   :  { %2020 = vmatprep.subr.bf16.mxu0 %v2282_v41 }
  0xcb   :  { %2021 = vmatpush3.bf16.msra.mxu0 %v2267_v27 }
  0xcc   :  { %2022 = vmatprep.subr.bf16.mxu0 %v2282_v41 }
  0xcf   :  { %2023 = vmatpush3.bf16.msra.mxu0 %v2268_v28 }
  0xf8   :  { %v1911_v31 = vpop.f32.mrb[0].mxu1 }
  0xf9   :  { %v1912_v32 = vpop.f32.mrb[1].mxu1 }
  0xfa   :  { %v1913_v33 = vadd.f32 %v1912_v32, %v1911_v31  ;;  %v1914_v34 = vpop.f32.mrb[2].mxu1  ;;  %v2271_v31 = vld [vmem:[%s2939_s4 + $0x10] sm:$0xff]   ;;  %v2272_v32 = vld [vmem:[%s2939_s4 + $0x18] sm:$0xff]  }
  0xfb   :  { %v1915_v35 = vpop.f32.mrb[3].mxu1  ;;  %v2274_v34 = vld [vmem:[%s2939_s4 + $0x28] sm:$0xff]  }
  0xfc   :  { %v1116_v47 = vadd.f32 %v1913_v33, %v242_v46  ;;  %v2273_v33 = vld [vmem:[%s2939_s4 + $0x20] sm:$0xff]  }
 0x118   :  { %v1933_v48 = vpop.f32.mrb[4].mxu1 }
 0x119   :  { %v1934_v49 = vpop.f32.mrb[5].mxu1 }
 0x11a   :  { %v1935_v50 = vadd.f32 %v1934_v49, %v1933_v48  ;;  %v1936_v51 = vpop.f32.mrb[6].mxu1 }
 0x11b   :  { %v1937_v52 = vpop.f32.mrb[7].mxu1 }
 0x11c   :  { %v1156_v53 = vadd.f32 %v1935_v50, %v1116_v47  ;;  %v2275_v52 = vld [vmem:[%s2939_s4 + $0x30] sm:$0xff]  }
 0x148   :  { %v1195_v54 = vpop.f32.mrb[8].mxu1 }
 0x149   :  { %v1196_v55 = vadd.f32 %v1195_v54, %v1156_v53  ;;  %v1197_v56 = vpop.f32.mrb[9].mxu1  ;;  %v2276_v53 = vld [vmem:[%s2939_s4 + $0x38] sm:$0xff]   ;;  %v1503_v54 = vsub.s32 2, %v2808_v42 }
 0x14a   :  { %v1198_v57 = vpop.f32.mrb[10].mxu1 }
 0x14b   :  { %v1199_v58 = vpop.f32.mrb[11].mxu1  ;;  %v1203_v19 = vmax.f32 %v1196_v55, 0.0  ;;  %v1504_v55 = vrot.slane %v2819_v59, %v1503_v54 }
 0x14d   :  { %v1206_v20 = vpack.c.bf16 %v1203_v19, %v1203_v19 }
 0x185   :  { %v1074_v1 = vpop.f32.mrb[0].mxu0 }
 0x186   :  { %v2048_v2 = vadd.f32 %v1074_v1, %v234_v63  ;;  %v1076_v3 = vpop.f32.mrb[1].mxu0 }
 0x187   :  { %v2049_v4 = vadd.f32 %v1076_v3, %v238_v0  ;;  %v1078_v5 = vpop.f32.mrb[2].mxu0  ;;  %v1613_v0 = vsub.s32 3, %v2808_v42 }
 0x188   :  { %v1201_v6 = vmax.f32 %v2048_v2, 0.0  ;;  %v1079_v7 = vpop.f32.mrb[3].mxu0 }
 0x189   :  { %v1202_v8 = vmax.f32 %v2049_v4, 0.0 }
 0x18a   :  { %v1204_v11 = vpack.c.bf16 %v1201_v6, %v1201_v6 }
 0x18b   :  { %v1205_v9 = vpack.c.bf16 %v1202_v8, %v1202_v8 }
 0x18d   :  { %1435 = vmatprep.mubr.bf16.mxu1 %v1205_v9 }
 0x18e   :  { %1436 = vmatmul.mubr.bf16.vlgmr.msra.gmra.mrb[12].mxu1 %v1204_v11 }
 0x18f   :  { %1989 = vmatpush3.bf16.msra.mxu1 %v2253_v10  ;;  %2004 = vmatprep.mubr.msk.bf16.mxu1 %vm2283_vm2, %v2282_v41 }
 0x190   :  { %1990 = vmatprep.subr.bf16.mxu1 %v2282_v41 }
 0x193   :  { %1991 = vmatpush3.bf16.msra.mxu1 %v2254_v12 }
 0x194   :  { %1992 = vmatprep.subr.bf16.mxu1 %v2282_v41 }
 0x197   :  { %1993 = vmatpush3.bf16.msra.mxu1 %v2255_v13 }
 0x198   :  { %1994 = vmatprep.subr.bf16.mxu1 %v2282_v41 }
 0x19b   :  { %1995 = vmatpush3.bf16.msra.mxu1 %v2256_v14 }
 0x19c   :  { %1996 = vmatprep.subr.bf16.mxu1 %v2282_v41 }
 0x19f   :  { %1997 = vmatpush3.bf16.msra.mxu1 %v2257_v15 }
 0x1a0   :  { %1998 = vmatprep.subr.bf16.mxu1 %v2282_v41 }
 0x1a3   :  { %1999 = vmatpush3.bf16.msra.mxu1 %v2258_v16 }
 0x1a4   :  { %2000 = vmatprep.subr.bf16.mxu1 %v2282_v41 }
 0x1a7   :  { %2001 = vmatpush3.bf16.msra.mxu1 %v2259_v17 }
 0x1a8   :  { %2002 = vmatprep.subr.bf16.mxu1 %v2282_v41 }
 0x1ab   :  { %2003 = vmatpush3.bf16.msra.mxu1 %v2260_v18 }
 0x1ac   :  { %2028 = vmatprep.subr.bf16.mxu1 %v2282_v41 }
 0x1ae   :  { %2005 = vmatmul.mubr.bf16.vlgmr.msra.gmra.mrb[16].mxu1 %v1206_v20 }
 0x1af   :  { %2044 = vmatprep.mubr.msk.bf16.mxu1 %vm2283_vm2, %v2282_v41  ;;  %2029 = vmatpush3.bf16.msra.mxu1 %v2269_v29 }
 0x1b0   :  { %2030 = vmatprep.subr.bf16.mxu1 %v2282_v41 }
 0x1b3   :  { %2031 = vmatpush3.bf16.msra.mxu1 %v2270_v30 }
 0x1b4   :  { %2032 = vmatprep.subr.bf16.mxu1 %v2282_v41 }
 0x1b7   :  { %2033 = vmatpush3.bf16.msra.mxu1 %v2271_v31 }
 0x1b8   :  { %2034 = vmatprep.subr.bf16.mxu1 %v2282_v41 }
 0x1bb   :  { %2035 = vmatpush3.bf16.msra.mxu1 %v2272_v32 }
 0x1bc   :  { %2036 = vmatprep.subr.bf16.mxu1 %v2282_v41 }
 0x1bf   :  { %2037 = vmatpush3.bf16.msra.mxu1 %v2273_v33 }
 0x1c0   :  { %2038 = vmatprep.subr.bf16.mxu1 %v2282_v41 }
 0x1c3   :  { %2039 = vmatpush3.bf16.msra.mxu1 %v2274_v34 }
 0x1c4   :  { %2040 = vmatprep.subr.bf16.mxu1 %v2282_v41 }
 0x1c7   :  { %2041 = vmatpush3.bf16.msra.mxu1 %v2275_v52 }
 0x1c8   :  { %2042 = vmatprep.subr.bf16.mxu1 %v2282_v41  ;;  %v1614_v41 = vrot.slane %v2819_v59, %v1613_v0 }
 0x1cb   :  { %2043 = vmatpush3.bf16.msra.mxu1 %v2276_v53 }
 0x261   :  { %v1955_v35 = vpop.f32.mrb[12].mxu1 }
 0x262   :  { %v1956_v36 = vpop.f32.mrb[13].mxu1 }
 0x263   :  { %v1957_v37 = vadd.f32 %v1956_v36, %v1955_v35  ;;  %v1958_v38 = vpop.f32.mrb[14].mxu1 }
 0x264   :  { %v1959_v39 = vpop.f32.mrb[15].mxu1 }
 0x265   :  { %v1438_v44 = vadd.f32 %v1957_v37, %v1258_v43 }
 0x281   :  { %v1477_v45 = vpop.f32.mrb[16].mxu1 }
 0x282   :  { %v1478_v46 = vadd.f32 %v1477_v45, %v1438_v44  ;;  %v2006_v47 = vpop.f32.mrb[17].mxu1 }
 0x283   :  { %v1480_v48 = vpop.f32.mrb[18].mxu1 }
 0x284   :  { %v1483_v49 = vmax.f32 %v1478_v46, 0.0  ;;  %v2007_v50 = vpop.f32.mrb[19].mxu1 }
 0x286   :  { %v1484_v51 = vpack.c.bf16 %v1483_v49, %v1483_v49 }
 0x288   :  { %2025 = vmatmul.mubr.bf16.vlgmr.msra.gmra.mrb[4].mxu0 %v1484_v51 }
 0x35b   :  { %v1587_v56 = vpop.f32.mrb[4].mxu0 }
 0x35c   :  { %v1588_v57 = vadd.f32 %v1587_v56, %v1504_v55  ;;  %v2026_v58 = vpop.f32.mrb[5].mxu0 }
 0x35d   :  { %v1590_v60 = vpop.f32.mrb[6].mxu0 }
 0x35e   :  { %v1593_v61 = vmax.f32 %v1588_v57, 0.0  ;;  %v2027_v62 = vpop.f32.mrb[7].mxu0 }
 0x360   :  { %v1594_v63 = vpack.c.bf16 %v1593_v61, %v1593_v61 }
 0x362   :  { %2045 = vmatmul.mubr.bf16.vlgmr.msra.gmra.mrb[20].mxu1 %v1594_v63 }
 0x435   :  { %v1697_v1 = vpop.f32.mrb[20].mxu1 }
 0x436   :  { %v1698_v2 = vadd.f32 %v1697_v1, %v1614_v41  ;;  %v2046_v3 = vpop.f32.mrb[21].mxu1 }
 0x437   :  { %v1700_v4 = vpop.f32.mrb[22].mxu1 }
 0x438   :  { %v2047_v5 = vpop.f32.mrb[23].mxu1  ;;  %v1704_v6 = vsel %vm1703_vm3, %v1698_v2, -inf }
 0x439   :  { %1705 = vmax.xlane.f32.xlu0 %v1704_v6 }
 0x4c6   :  { %v1706_v7 = vpop.xlane.xlu0 %1705 }
 0x4c7   :  { %v1707_v8 = vsub.f32 %v1698_v2, %v1706_v7 }
 0x4c9   :  { %v1708_v9 = vmul.f32 1.442695, %v1707_v8 }
 0x4cb   :  { %2277 = vpow2.f32 %v1708_v9 }
 0x4d5   :  { %v2278_v10 = vpop.eup %2277 }
 0x4d6   :  { %v1710_v11 = vsel %vm1703_vm3, %v2278_v10, 0.0 }
 0x4d7   :  { %1711 = vadd.xlane.f32.xlu0 %v1710_v11 }
 0x564   :  { %v1712_v42 = vpop.xlane.xlu0 %1711 }
 0x565   :  { %2279 = vrcp.f32 %v1712_v42 }
 0x56f   :  { %v2280_v59 = vpop.eup %2279 }
 0x570   :  { %v1714_v12 = vmul.f32 %v2280_v59, %v2278_v10 }
 0x572   :  { %1715 = vst.msk [vmem:[%s2940_s6] sm:$0xff] %vm1703_vm3, %v1714_v12 }

</bundles_post_ra>
